<compile_context>
chip_gen: v7x
topology: tpu7x:2x2x1
jax: 0.10.0
libtpu: 0.0.40
codegen_flags: <defaults>
</compile_context>

<pallas_src>
import jax
import jax.numpy as jnp
from jax import lax
from jax.experimental import pallas as pl
from jax.experimental.pallas import tpu as pltpu


_SUB = 128  # rows per inner sub-chunk (bounds live f32 intermediates / spills)


def _round_up(n, m):
    return ((n + m - 1) // m) * m


def _cdiv(a, b):
    return -(-a // b)


def mlp_kernel(x_ref,
               w1_ref, b1_ref,
               w2_ref, b2_ref,
               w3_ref, b3_ref,
               w4_ref, b4_ref,
               o_ref):
    """One batch tile of the 4-layer MLP. Weights/biases are grid-resident."""
    tb = x_ref.shape[0]

    w1 = w1_ref[...]   # f32 (parity for fc1)
    b1 = b1_ref[...]
    w2 = w2_ref[...]   # bf16 (cast in wrapper), MXU input
    b2 = b2_ref[...]
    w3 = w3_ref[...]   # bf16
    b3 = b3_ref[...]
    w4 = w4_ref[...]   # bf16
    b4 = b4_ref[...]

    def compute_rows(row_start, nrows):
        x = x_ref[pl.ds(row_start, nrows), :]

        # fc1: tiny K (=3) but the MXU has slack while the VALU slot binds,
        # so run it on the MXU in f32 (keeps f32 parity for layer 1).
        h1 = jnp.dot(x, w1, preferred_element_type=jnp.float32) + b1
        h1 = jnp.maximum(h1, 0.0)

        # fc2-fc4: bf16 MXU inputs, f32 accumulation, f32 bias/ReLU.
        h2 = jnp.dot(h1.astype(jnp.bfloat16), w2,
                     preferred_element_type=jnp.float32) + b2
        h2 = jnp.maximum(h2, 0.0)

        h3 = jnp.dot(h2.astype(jnp.bfloat16), w3,
                     preferred_element_type=jnp.float32) + b3
        h3 = jnp.maximum(h3, 0.0)

        h4 = jnp.dot(h3.astype(jnp.bfloat16), w4,
                     preferred_element_type=jnp.float32) + b4

        # TODO(synk): output last dim is 7 (<128) -> masked vst; a
        # batch-in-lanes transposed layout would fix it but requires the
        # caller to accept [7, B] outputs.
        o_ref[pl.ds(row_start, nrows), :] = h4.astype(o_ref.dtype)

    num_full = tb // _SUB
    rem = tb % _SUB

    if num_full == 1:
        compute_rows(0, _SUB)
    elif num_full > 1:
        def body(c, carry):
            start = pl.multiple_of(c * _SUB, _SUB)
            compute_rows(start, _SUB)
            return carry

        lax.fori_loop(0, num_full, body, 0, unroll=2)

    if rem > 0:
        compute_rows(num_full * _SUB, rem)


def net_forward(x, params, *, batch_tile=4096):
    """x: [batch, featureLength] f32; params: dict of (w, b) per layer."""
    batch, f_in = x.shape
    out_dim = params["w4"].shape[1]

    # --- Tile heuristic (minimal pad waste, v7x two-TC guarantee) ----------
    padded8 = _round_up(batch, 8)
    num_tiles = _cdiv(padded8, batch_tile)
    if padded8 >= 2 * _SUB:
        # Batch is big enough to split: use >= 2 tiles (and an even count) so
        # the "parallel" axis gives both v7x TensorCores work; no-op on
        # single-TC v5e/v6e beyond a tiny per-step overhead.
        num_tiles = max(num_tiles, 2)
        if num_tiles % 2:
            num_tiles += 1
    tb = _round_up(_cdiv(padded8, num_tiles), 8)
    padded_batch = num_tiles * tb

    if padded_batch != batch:
        x = jnp.pad(x, ((0, padded_batch - batch), (0, 0)))

    # Resident operands: fc1 stays f32; fc2-4 weights stored bf16.
    w1, b1 = params["w1"], params["b1"]
    w2, b2 = params["w2"].astype(jnp.bfloat16), params["b2"]
    w3, b3 = params["w3"].astype(jnp.bfloat16), params["b3"]
    w4, b4 = params["w4"].astype(jnp.bfloat16), params["b4"]

    def resident(a):
        # Constant block index across the grid -> DMA'd once, stays in VMEM.
        return pl.BlockSpec(a.shape, lambda i: (0, 0))

    out = pl.pallas_call(
        mlp_kernel,
        out_shape=jax.ShapeDtypeStruct((padded_batch, out_dim), jnp.float32),
        grid=(num_tiles,),
        in_specs=[
            pl.BlockSpec((tb, f_in), lambda i: (i, 0)),   # x streams per step
            resident(w1), resident(b1),
            resident(w2), resident(b2),
            resident(w3), resident(b3),
            resident(w4), resident(b4),
        ],
        out_specs=pl.BlockSpec((tb, out_dim), lambda i: (i, 0)),
        compiler_params=pltpu.CompilerParams(
            # Independent batch axis: shard across the 2 TCs on v7x.
            dimension_semantics=("parallel",),
            # Explicit budget: double-buffered x/out lane-padded blocks are
            # ~tb*2 KiB total (8 MiB at tb=4096) + <64 KiB of weights; safe on
            # v7x's 64 MiB physical VMEM and under v6e's scoped default.
            vmem_limit_bytes=32 * 1024 * 1024,
        ),
    )(x, w1, b1, w2, b2, w3, b3, w4, b4)

    return out[:batch]


def init_linear_params(key, in_features, out_features):
    """Mimic torch.nn.Linear default init: U(-1/sqrt(in), 1/sqrt(in))."""
    kw, kb = jax.random.split(key)
    bound = 1.0 / jnp.sqrt(jnp.float32(in_features))
    w = jax.random.uniform(kw, (in_features, out_features), jnp.float32,
                           minval=-bound, maxval=bound)
    b = jax.random.uniform(kb, (1, out_features), jnp.float32,
                           minval=-bound, maxval=bound)
    return w, b


def make_params(key, feature_length):
    dims = [(feature_length, 32), (32, 64), (64, 128), (128, 7)]
    keys = jax.random.split(key, len(dims))
    params = {}
    for i, ((din, dout), k) in enumerate(zip(dims, keys), start=1):
        w, b = init_linear_params(k, din, dout)
        params[f"w{i}"] = w
        params[f"b{i}"] = b
    return params


if __name__ == "__main__":
    feature_length = 3   # len(dataFrame.columns) - 1 with 4 selected columns

    key = jax.random.PRNGKey(0)
    k_params, k_small, k_big = jax.random.split(key, 3)
    params = make_params(k_params, feature_length)

    # Small smoke test: single tile, remainder-only path (tb=8 < _SUB).
    x_small = jax.random.normal(k_small, (8, feature_length), jnp.float32)
    out_small = jax.block_until_ready(net_forward(x_small, params))

    # Ragged batch: exercises the new tile heuristic (batch=1000 -> 2 tiles of
    # 504 rows, only 8 pad rows), the inner fori_loop (3 full 128-row
    # sub-chunks) plus a 120-row tail, and the parallel 2-step grid.
    x_big = jax.random.normal(k_big, (1000, feature_length), jnp.float32)
    out_big = jax.block_until_ready(net_forward(x_big, params, batch_tile=512))

    def ref_bf16(x):
        # Mirrors the kernel's numerics (fc1 f32; fc2-4 bf16 MXU inputs,
        # f32 accumulation).
        h = jnp.maximum(x @ params["w1"] + params["b1"], 0.0)
        for i in (2, 3, 4):
            h = jnp.dot(h.astype(jnp.bfloat16),
                        params[f"w{i}"].astype(jnp.bfloat16),
                        preferred_element_type=jnp.float32) + params[f"b{i}"]
            if i != 4:
                h = jnp.maximum(h, 0.0)
        return h

    def ref_f32(x):
        # Pure f32 reference of the original torch forward.
        h = x
        for i in (1, 2, 3):
            h = jnp.maximum(h @ params[f"w{i}"] + params[f"b{i}"], 0.0)
        return h @ params["w4"] + params["b4"]

    for out, xin in ((out_small, x_small), (out_big, x_big)):
        assert out.shape == (xin.shape[0], 7)
        assert jnp.allclose(out, ref_bf16(xin), atol=1e-2, rtol=1e-2)
        assert jnp.allclose(out, ref_f32(xin), atol=1e-1, rtol=1e-1)

    print("KERNEL_OK")
</pallas_src>

<mosaic_0001>
module attributes {stable_mosaic.version = 11 : i64} {
  func.func @mlp_kernel(%arg0: i32, %arg1: memref<8x3xf32, #tpu.memory_space<vmem>>, %arg2: memref<3x32xf32, #tpu.memory_space<vmem>>, %arg3: memref<1x32xf32, #tpu.memory_space<vmem>>, %arg4: memref<32x64xbf16, #tpu.memory_space<vmem>>, %arg5: memref<1x64xf32, #tpu.memory_space<vmem>>, %arg6: memref<64x128xbf16, #tpu.memory_space<vmem>>, %arg7: memref<1x128xf32, #tpu.memory_space<vmem>>, %arg8: memref<128x7xbf16, #tpu.memory_space<vmem>>, %arg9: memref<1x7xf32, #tpu.memory_space<vmem>>, %arg10: memref<8x7xf32, #tpu.memory_space<vmem>>) attributes {dimension_semantics = [#tpu.dimension_semantics<parallel>], iteration_bounds = array<i64: 1>, scalar_prefetch = 0 : i64, scratch_operands = 0 : i64, tpu.core_type = #tpu.core_type<tc>, window_params = [{transform_indices = @transform_0, window_bounds = array<i64: 8, 3>}, {pipeline_mode = #tpu.pipeline_mode<synchronous>, transform_indices = @transform_1, window_bounds = array<i64: 3, 32>}, {pipeline_mode = #tpu.pipeline_mode<synchronous>, transform_indices = @transform_2, window_bounds = array<i64: 1, 32>}, {pipeline_mode = #tpu.pipeline_mode<synchronous>, transform_indices = @transform_3, window_bounds = array<i64: 32, 64>}, {pipeline_mode = #tpu.pipeline_mode<synchronous>, transform_indices = @transform_4, window_bounds = array<i64: 1, 64>}, {pipeline_mode = #tpu.pipeline_mode<synchronous>, transform_indices = @transform_5, window_bounds = array<i64: 64, 128>}, {pipeline_mode = #tpu.pipeline_mode<synchronous>, transform_indices = @transform_6, window_bounds = array<i64: 1, 128>}, {pipeline_mode = #tpu.pipeline_mode<synchronous>, transform_indices = @transform_7, window_bounds = array<i64: 128, 7>}, {pipeline_mode = #tpu.pipeline_mode<synchronous>, transform_indices = @transform_8, window_bounds = array<i64: 1, 7>}, {transform_indices = @transform_9, window_bounds = array<i64: 8, 7>}]} {
    %c0 = arith.constant 0 : index
    %c0_0 = arith.constant 0 : index
    %0 = vector.load %arg2[%c0, %c0_0] : memref<3x32xf32, #tpu.memory_space<vmem>>, vector<3x32xf32>
    %c0_1 = arith.constant 0 : index
    %c0_2 = arith.constant 0 : index
    %1 = vector.load %arg3[%c0_1, %c0_2] : memref<1x32xf32, #tpu.memory_space<vmem>>, vector<1x32xf32>
    %c0_3 = arith.constant 0 : index
    %c0_4 = arith.constant 0 : index
    %2 = vector.load %arg4[%c0_3, %c0_4] : memref<32x64xbf16, #tpu.memory_space<vmem>>, vector<32x64xbf16>
    %c0_5 = arith.constant 0 : index
    %c0_6 = arith.constant 0 : index
    %3 = vector.load %arg5[%c0_5, %c0_6] : memref<1x64xf32, #tpu.memory_space<vmem>>, vector<1x64xf32>
    %c0_7 = arith.constant 0 : index
    %c0_8 = arith.constant 0 : index
    %4 = vector.load %arg6[%c0_7, %c0_8] : memref<64x128xbf16, #tpu.memory_space<vmem>>, vector<64x128xbf16>
    %c0_9 = arith.constant 0 : index
    %c0_10 = arith.constant 0 : index
    %5 = vector.load %arg7[%c0_9, %c0_10] : memref<1x128xf32, #tpu.memory_space<vmem>>, vector<1x128xf32>
    %c0_11 = arith.constant 0 : index
    %c0_12 = arith.constant 0 : index
    %6 = vector.load %arg8[%c0_11, %c0_12] : memref<128x7xbf16, #tpu.memory_space<vmem>>, vector<128x7xbf16>
    %c0_13 = arith.constant 0 : index
    %c0_14 = arith.constant 0 : index
    %7 = vector.load %arg9[%c0_13, %c0_14] : memref<1x7xf32, #tpu.memory_space<vmem>>, vector<1x7xf32>
    %c0_15 = arith.constant 0 : index
    %c0_16 = arith.constant 0 : index
    %8 = vector.load %arg1[%c0_15, %c0_16] : memref<8x3xf32, #tpu.memory_space<vmem>>, vector<8x3xf32>
    %cst = arith.constant dense<0.000000e+00> : vector<8x32xf32>
    %9 = tpu.matmul %8, %0, %cst {dimension_numbers = #tpu.dot_dimension_numbers<[1], [0], [0], [1], [0, 0, 1, 1], [], []>} : vector<8x3xf32>, vector<3x32xf32>, vector<8x32xf32> -> vector<8x32xf32>
    %10 = vector.broadcast %1 : vector<1x32xf32> to vector<8x32xf32>
    %11 = arith.addf %9, %10 : vector<8x32xf32>
    %cst_17 = arith.constant 0.000000e+00 : f32
    %12 = vector.broadcast %cst_17 : f32 to vector<8x32xf32>
    %13 = arith.maximumf %11, %12 : vector<8x32xf32>
    %14 = arith.truncf %13 : vector<8x32xf32> to vector<8x32xbf16>
    %cst_18 = arith.constant dense<0.000000e+00> : vector<8x64xf32>
    %15 = tpu.matmul %14, %2, %cst_18 {dimension_numbers = #tpu.dot_dimension_numbers<[1], [0], [0], [1], [0, 0, 1, 1], [], []>} : vector<8x32xbf16>, vector<32x64xbf16>, vector<8x64xf32> -> vector<8x64xf32>
    %16 = vector.broadcast %3 : vector<1x64xf32> to vector<8x64xf32>
    %17 = arith.addf %15, %16 : vector<8x64xf32>
    %cst_19 = arith.constant 0.000000e+00 : f32
    %18 = vector.broadcast %cst_19 : f32 to vector<8x64xf32>
    %19 = arith.maximumf %17, %18 : vector<8x64xf32>
    %20 = arith.truncf %19 : vector<8x64xf32> to vector<8x64xbf16>
    %cst_20 = arith.constant dense<0.000000e+00> : vector<8x128xf32>
    %21 = tpu.matmul %20, %4, %cst_20 {dimension_numbers = #tpu.dot_dimension_numbers<[1], [0], [0], [1], [0, 0, 1, 1], [], []>} : vector<8x64xbf16>, vector<64x128xbf16>, vector<8x128xf32> -> vector<8x128xf32>
    %22 = vector.broadcast %5 : vector<1x128xf32> to vector<8x128xf32>
    %23 = arith.addf %21, %22 : vector<8x128xf32>
    %cst_21 = arith.constant 0.000000e+00 : f32
    %24 = vector.broadcast %cst_21 : f32 to vector<8x128xf32>
    %25 = arith.maximumf %23, %24 : vector<8x128xf32>
    %26 = arith.truncf %25 : vector<8x128xf32> to vector<8x128xbf16>
    %cst_22 = arith.constant dense<0.000000e+00> : vector<8x7xf32>
    %27 = tpu.matmul %26, %6, %cst_22 {dimension_numbers = #tpu.dot_dimension_numbers<[1], [0], [0], [1], [0, 0, 1, 1], [], []>} : vector<8x128xbf16>, vector<128x7xbf16>, vector<8x7xf32> -> vector<8x7xf32>
    %28 = vector.broadcast %7 : vector<1x7xf32> to vector<8x7xf32>
    %29 = arith.addf %27, %28 : vector<8x7xf32>
    %c0_23 = arith.constant 0 : index
    %c0_24 = arith.constant 0 : index
    %30 = vector.load %arg10[%c0_23, %c0_24] : memref<8x7xf32, #tpu.memory_space<vmem>>, vector<8x7xf32>
    tpu.vector_store %arg10[%c0_23, %c0_24], %29 {strides = array<i32>} : memref<8x7xf32, #tpu.memory_space<vmem>>, vector<8x7xf32>,
    return
  }
  func.func @transform_0(%arg0: i32) -> (i32, i32) {
    %c0_i32 = arith.constant 0 : i32
    %c0_i32_0 = arith.constant 0 : i32
    return %arg0, %c0_i32 : i32, i32
  }
  func.func @transform_1(%arg0: i32) -> (i32, i32) {
    %c0_i32 = arith.constant 0 : i32
    %c0_i32_0 = arith.constant 0 : i32
    %c0_i32_1 = arith.constant 0 : i32
    return %c0_i32, %c0_i32_0 : i32, i32
  }
  func.func @transform_2(%arg0: i32) -> (i32, i32) {
    %c0_i32 = arith.constant 0 : i32
    %c0_i32_0 = arith.constant 0 : i32
    %c0_i32_1 = arith.constant 0 : i32
    return %c0_i32, %c0_i32_0 : i32, i32
  }
  func.func @transform_3(%arg0: i32) -> (i32, i32) {
    %c0_i32 = arith.constant 0 : i32
    %c0_i32_0 = arith.constant 0 : i32
    %c0_i32_1 = arith.constant 0 : i32
    return %c0_i32, %c0_i32_0 : i32, i32
  }
  func.func @transform_4(%arg0: i32) -> (i32, i32) {
    %c0_i32 = arith.constant 0 : i32
    %c0_i32_0 = arith.constant 0 : i32
    %c0_i32_1 = arith.constant 0 : i32
    return %c0_i32, %c0_i32_0 : i32, i32
  }
  func.func @transform_5(%arg0: i32) -> (i32, i32) {
    %c0_i32 = arith.constant 0 : i32
    %c0_i32_0 = arith.constant 0 : i32
    %c0_i32_1 = arith.constant 0 : i32
    return %c0_i32, %c0_i32_0 : i32, i32
  }
  func.func @transform_6(%arg0: i32) -> (i32, i32) {
    %c0_i32 = arith.constant 0 : i32
    %c0_i32_0 = arith.constant 0 : i32
    %c0_i32_1 = arith.constant 0 : i32
    return %c0_i32, %c0_i32_0 : i32, i32
  }
  func.func @transform_7(%arg0: i32) -> (i32, i32) {
    %c0_i32 = arith.constant 0 : i32
    %c0_i32_0 = arith.constant 0 : i32
    %c0_i32_1 = arith.constant 0 : i32
    return %c0_i32, %c0_i32_0 : i32, i32
  }
  func.func @transform_8(%arg0: i32) -> (i32, i32) {
    %c0_i32 = arith.constant 0 : i32
    %c0_i32_0 = arith.constant 0 : i32
    %c0_i32_1 = arith.constant 0 : i32
    return %c0_i32, %c0_i32_0 : i32, i32
  }
  func.func @transform_9(%arg0: i32) -> (i32, i32) {
    %c0_i32 = arith.constant 0 : i32
    %c0_i32_0 = arith.constant 0 : i32
    return %arg0, %c0_i32 : i32, i32
  }
}

</mosaic_0001>

<bundles_post_ra>
// kernel: tpu_custom_call.1
= control target key start
LH: loop header
LB: loop body
LE: loop exit
PB: predicated region body
PF: predicated region fallthrough
CT: control target
= control target key end

     0   :  { %vm78_vm0 = vcmask 1042432   ;;  %v531_v2 = vmov 0.0   ;;  %vm532_vm1 = vmmov 0   ;;  %vm74_vm2 = vcmask 23552   ;;  %s679_s0 = inlined_call_operand.vmem [shape: f32[8,3], index: 0, kind: input, shape index: {}]   ;;  %s680_s1 = inlined_call_operand.vmem [shape: f32[3,32], index: 1, kind: input, shape index: {}]   ;;  %s681_s2 = inlined_call_operand.vmem [shape: f32[1,32], index: 2, kind: input, shape index: {}]   ;;  %s682_s3 = inlined_call_operand.vmem [shape: bf16[32,64], index: 3, kind: input, shape index: {}]   ;;  %s683_s4 = inlined_call_operand.vmem [shape: f32[1,64], index: 4, kind: input, shape index: {}]   ;;  %s684_s5 = inlined_call_operand.vmem [shape: bf16[64,128], index: 5, kind: input, shape index: {}]   ;;  %s685_s6 = inlined_call_operand.vmem [shape: f32[1,128], index: 6, kind: input, shape index: {}]   ;;  %s686_s7 = inlined_call_operand.vmem [shape: bf16[128,7], index: 7, kind: input, shape index: {}]   ;;  %s687_s8 = inlined_call_operand.vmem [shape: f32[1,7], index: 8, kind: input, shape index: {}]   ;;  %s688_s9 = inlined_call_operand.hbm [shape: f32[8,7], index: 9, kind: output, shape index: {}]  }
   0x1   :  { %v34_v0 = vld [vmem:[%s680_s1] sm:$0x7]  ;;  %445 = vmatprep.subr.mxu0 %v531_v2  ;;  %447 = vmatprep.mubr.msk.f32.mxu0 %vm532_vm1, %v531_v2 }
   0x2   :  { %v67_v1 = vld [vmem:[%s679_s0] sm:$0xff]  ;;  %446 = vmatpush3.msk.msra.mxu0 %vm78_vm0, %v34_v0  ;;  %470 = vmatprep.subr.bf16.mxu1 %v531_v2 }
   0x3   :  { %448 = vmatmul.mubr.msk.f32.vlgmr.msra.gmra.mrb[0].mxu0 %vm74_vm2, %v67_v1  ;;  %450 = vmatprep.subr.bf16.mxu0 %v531_v2 }
   0x4   :  { %454 = vmatprep.mubr.msk.bf16.mxu0 %vm532_vm1, %v531_v2  ;;  %486 = vmatprep.mubr.msk.bf16.mxu1 %vm532_vm1, %v531_v2 }
   0x5   :  { %14 = vsyncpa [#allocation3], 0  ;;  %v493_v3 = vld [vmem:[%s682_s3] sm:$0xff]   ;;  %v494_v4 = vld [vmem:[%s682_s3 + $0x8] sm:$0xff]   ;;  %vm172_vm3 = vcmask 261120   ;;  %vm248_vm4 = vcmask 523264  }
   0x6   :  { %451 = vmatpush3.bf16.msra.mxu0 %v493_v3  ;;  %v404_v5 = vld [vmem:[%s681_s2] ss:$0 sm:$0xff]  ;;  %v496_v12 = vld [vmem:[%s684_s5 + $0x8] sm:$0xff]   ;;  %v497_v13 = vld [vmem:[%s684_s5 + $0x10] sm:$0xff]   ;;  %s533_s19 = smov [#allocation2]   ;;  %vm388_vm5 = vcmask 56320  }
   0x7   :  { %452 = vmatprep.subr.bf16.mxu0 %v531_v2  ;;  %v495_v10 = vld [vmem:[%s684_s5] sm:$0xff]   ;;  %v498_v14 = vld [vmem:[%s684_s5 + $0x18] sm:$0xff]   ;;  %v500_v16 = vld [vmem:[%s686_s7 + $0x8] sm:$0xff]   ;;  %s396_s2 = sshll.u32 %s533_s19, 4  ;;  %s397_s2 = int_to_ptr.vmem [resolvable:$true] %s396_s2 }
   0x8   :  { %v499_v15 = vld [vmem:[%s686_s7] sm:$0xff]   ;;  %v501_v17 = vld [vmem:[%s686_s7 + $0x10] sm:$0xff]   ;;  %v502_v18 = vld [vmem:[%s686_s7 + $0x18] sm:$0xff]   ;;  %p512_p1 = scmp.lt.s32.totalorder %s397_s2, %s397_s2 }
   0x9   :  { %471 = vmatpush3.bf16.msra.mxu1 %v499_v15  ;;  %v503_v19 = vld [vmem:[%s686_s7 + $0x20] sm:$0xff]   ;;  %v504_v20 = vld [vmem:[%s686_s7 + $0x28] sm:$0xff]   ;;  %v505_v29 = vld [vmem:[%s686_s7 + $0x30] sm:$0xff]  }
   0xa   :  { %453 = vmatpush3.bf16.msra.mxu0 %v494_v4  ;;  %472 = vmatprep.subr.bf16.mxu1 %v531_v2  ;;  %v407_v21 = vld [vmem:[%s683_s4] ss:$0 sm:$0xff]  ;;  %v506_v30 = vld [vmem:[%s686_s7 + $0x38] sm:$0xff]  }
   0xb   :  { %458 = vmatprep.subr.bf16.mxu0 %v531_v2  ;;  %v411_v31 = vld [vmem:[%s685_s6] ss:$0 sm:$0xff]  ;;  %s507_s6 = scalar_lea.vmem %s397_s2, 128 }
   0xc   :  { %v417_v39 = vld [vmem:[%s687_s8] ss:$0 sm:$0xff]  ;;  %p508_p0 = scmp.ne.s32.totalorder %s397_s2, %s507_s6  ;;  %p513_p2 = scmp.lt.s32.totalorder %s507_s6, %s507_s6 }
   0xd   :  { %473 = vmatpush3.bf16.msra.mxu1 %v500_v16 }
   0xe   :  { %474 = vmatprep.subr.bf16.mxu1 %v531_v2  ;;  %p514_p3 = por %p513_p2, %p512_p1 }
  0x10   :  { %p515_p4 = pnand %p514_p3, %p508_p0 }
  0x11   :  { %475 = vmatpush3.bf16.msra.mxu1 %v501_v17 }
  0x12   :  { %476 = vmatprep.subr.bf16.mxu1 %v531_v2 }
  0x15   :  { %477 = vmatpush3.bf16.msra.mxu1 %v502_v18 }
  0x16   :  { %478 = vmatprep.subr.bf16.mxu1 %v531_v2 }
  0x19   :  { %479 = vmatpush3.bf16.msra.mxu1 %v503_v19 }
  0x1a   :  { %480 = vmatprep.subr.bf16.mxu1 %v531_v2 }
  0x1d   :  { %481 = vmatpush3.bf16.msra.mxu1 %v504_v20 }
  0x1e   :  { %482 = vmatprep.subr.bf16.mxu1 %v531_v2 }
  0x21   :  { %483 = vmatpush3.bf16.msra.mxu1 %v505_v29 }
  0x22   :  { %484 = vmatprep.subr.bf16.mxu1 %v531_v2 }
  0x25   :  { %485 = vmatpush3.bf16.msra.mxu1 %v506_v30 }
  0xd6   :  { %v148_v6 = vpop.f32.mrb[0].mxu0 }
  0xd7   :  { %v149_v7 = vadd.f32 %v404_v5, %v148_v6  ;;  %v449_v8 = vpop.f32.mrb[1].mxu0 }
  0xd9   :  { %v152_v9 = vmax.f32 %v149_v7, 0.0 }
  0xdb   :  { %v153_v11 = vpack.c.bf16 %v152_v9, %v152_v9 }
  0xdd   :  { %455 = vmatmul.mubr.msk.bf16.vlgmr.msra.gmra.mrb[4].mxu0 %vm172_vm3, %v153_v11 }
  0xde   :  { %459 = vmatpush3.bf16.msra.mxu0 %v495_v10  ;;  %466 = vmatprep.mubr.msk.bf16.mxu0 %vm532_vm1, %v531_v2 }
  0xdf   :  { %460 = vmatprep.subr.bf16.mxu0 %v531_v2 }
  0xe2   :  { %461 = vmatpush3.bf16.msra.mxu0 %v496_v12 }
  0xe3   :  { %462 = vmatprep.subr.bf16.mxu0 %v531_v2 }
  0xe6   :  { %463 = vmatpush3.bf16.msra.mxu0 %v497_v13 }
  0xe7   :  { %464 = vmatprep.subr.bf16.mxu0 %v531_v2 }
  0xea   :  { %465 = vmatpush3.bf16.msra.mxu0 %v498_v14 }
 0x1b0   :  { %v210_v22 = vpop.f32.mrb[4].mxu0 }
 0x1b1   :  { %v211_v23 = vadd.f32 %v407_v21, %v210_v22  ;;  %v456_v24 = vpop.f32.mrb[5].mxu0 }
 0x1b2   :  { %v213_v25 = vpop.f32.mrb[6].mxu0 }
 0x1b3   :  { %v216_v26 = vmax.f32 %v211_v23, 0.0  ;;  %v457_v27 = vpop.f32.mrb[7].mxu0 }
 0x1b5   :  { %v217_v28 = vpack.c.bf16 %v216_v26, %v216_v26 }
 0x1b7   :  { %467 = vmatmul.mubr.msk.bf16.vlgmr.msra.gmra.mrb[8].mxu0 %vm248_vm4, %v217_v28 }
 0x28a   :  { %v286_v32 = vpop.f32.mrb[8].mxu0 }
 0x28b   :  { %v287_v33 = vadd.f32 %v411_v31, %v286_v32  ;;  %v468_v34 = vpop.f32.mrb[9].mxu0 }
 0x28c   :  { %v289_v35 = vpop.f32.mrb[10].mxu0 }
 0x28d   :  { %v292_v36 = vmax.f32 %v287_v33, 0.0  ;;  %v469_v37 = vpop.f32.mrb[11].mxu0 }
 0x28f   :  { %v293_v38 = vpack.c.bf16 %v292_v36, %v292_v36 }
 0x291   :  { %487 = vmatmul.mubr.bf16.vlgmr.msra.gmra.mrb[0].mxu1 %v293_v38 }
 0x364   :  { %v382_v40 = vpop.f32.mrb[0].mxu1 }
 0x365   :  { %v383_v41 = vadd.f32 %v417_v39, %v382_v40  ;;  %v488_v42 = vpop.f32.mrb[1].mxu1 }
 0x366   :  { %v385_v43 = vpop.f32.mrb[2].mxu1 }
 0x367   :  { %v489_v44 = vpop.f32.mrb[3].mxu1  ;;  %389 = vst.msk [vmem:[#allocation2] sm:$0xff] %vm388_vm5, %v383_v41 }
 0x368   :  { %518 = shalt.err (!%p515_p4)
}
 0x369   :  { %s519_s8 = scalar_lea.hbm %s688_s9, 128 }
 0x36a   :  { %p520_p5 = scmp.ne.s32.totalorder %s688_s9, %s519_s8  ;;  %p523_p6 = scmp.lt.u32.totalorder %s519_s8, %s688_s9 }
 0x36c   :  { %p525_p7 = pnand %p523_p6, %p520_p5 }
 0x36e   :  { %528 = shalt.err (!%p525_p7)
}
 0x36f   :  { %399 = dma.vmem_to_hbm [thread:$0]  %s397_s2, 128, %s688_s9, [#allocation3]  }
 0x370   :  { %529 = dma.done.wait [#allocation3], 128  }
 0x371   :  { %530 = vsyncadd [#allocation3], 4294967168 }
 0x372   :  { %403 = vsyncpa [#allocation3], 1 }

</bundles_post_ra>
